<compile_context>
chip_gen: v7x
topology: tpu7x:2x2x1
jax: 0.10.0
libtpu: 0.0.40
codegen_flags: <defaults>
</compile_context>

<pallas_src>
import functools

import jax
import jax.numpy as jnp
from jax import lax
from jax.experimental import pallas as pl
from jax.experimental.pallas import tpu as pltpu


def _round_up(x, m):
    return (x + m - 1) // m * m


def _head_decode_kernel(gidx_ref, feat_ref, w_ref, b_ref, anch_ref, out_ref,
                        *, socs, bounds, ncls, cin):
    """Fused 1x1-conv head + dense YOLO decode for one lane-dense M-tile.

    gidx_ref : (2, TM)   f32  rows [h_idx, w_idx] of each position
    feat_ref : (Cin, TM) bf16 channels-on-sublanes feature tile
    w_ref    : (1, cols, Cin) f32 field-grouped head weight of this tile's scale
    b_ref    : (1, cols, 1)   f32 bias (same row order)
    anch_ref : (1, 6, 1)      f32 [aw0,aw1,aw2,ah0,ah1,ah2]/case for this scale
    out_ref  : (18, TM)  f32  rows [p_raw(3) | cx(3) | cy(3) | w(3) | h(3) | cls(3)]
    """
    i = pl.program_id(0)
    # stride/case for this tile's scale: compile-time constants selected by tile id
    soc = jnp.where(i < bounds[0], socs[0],
                    jnp.where(i < bounds[1], socs[1], socs[2])).astype(jnp.float32)

    feat = feat_ref[...].astype(jnp.float32)          # one bf16->f32 convert per tile
    wt = w_ref[0]                                     # (cols, Cin)
    # 1x1 conv as Cin broadcast-FMAs on the VPU: a (TM,4)@(4,24) MXU matmul would
    # light up 4 of 128/256 systolic rows for ~0 useful FLOPs (store-bound kernel).
    # TODO(synk): for a real Darknet head (Cin=256/512/1024) switch this back to
    # jnp.dot(..., preferred_element_type=jnp.float32) on the MXU.
    y = b_ref[0]                                      # (cols, 1), broadcasts below
    for k in range(cin):                              # static unroll
        y = y + wt[:, k:k + 1] * feat[k:k + 1, :]     # (cols,1)*(1,TM) -> (cols,TM)

    h_idx = gidx_ref[0:1, :]                          # (1, TM)
    w_idx = gidx_ref[1:2, :]
    p_raw = y[0:3, :]                                 # raw conf logits, 3 anchors
    # NOTE: the torch source adds tx/ty to the grid index WITHOUT a sigmoid and
    # thresholds the RAW conf logit; both behaviours are reproduced exactly.
    cx = (w_idx + y[3:6, :]) * soc
    cy = (h_idx + y[6:9, :]) * soc
    bwh = jnp.exp(y[9:15, :]) * anch_ref[0]           # (6,TM) * (6,1): w rows, h rows

    # first-occurrence class argmax per anchor (sublane reductions on the XLU)
    tm = y.shape[1]
    ids = lax.broadcasted_iota(jnp.int32, (ncls, tm), 0)
    cls_rows = []
    for a in range(3):                                # static anchor loop
        ca = y[15 + a * ncls:15 + (a + 1) * ncls, :]  # (ncls, TM)
        mx = jnp.max(ca, axis=0, keepdims=True)
        cand = jnp.where(ca == mx, ids, ncls)
        cls_rows.append(jnp.min(cand, axis=0, keepdims=True).astype(jnp.float32))
    cls_idx = jnp.concatenate(cls_rows, axis=0)       # (3, TM)
    # TODO(synk): for large ncls (~80) replace max+where+min with a packed-key
    # (value high bits | flipped index low bits) single max reduce to halve XLU work.

    # one full-lane-width store of the whole tile
    out_ref[...] = jnp.concatenate([p_raw, cx, cy, bwh, cls_idx], axis=0)


def _pick_tile(m_list, tile_cap=1024):
    """Split the largest scale into >=2 lane-aligned tiles (dual-TC on v7x) and
    cap the tile so double-buffered (Cin+2+18)-row f32/bf16 tiles stay a few
    hundred KB -- far below the 64 MiB (v7x) / 128 MiB (v5e/v6e) VMEM budgets."""
    m_max = max(m_list)
    n_t = max(2, pl.cdiv(m_max, tile_cap))
    return max(128, min(_round_up(pl.cdiv(m_max, n_t), 128), _round_up(tile_cap, 128)))


@functools.partial(jax.jit, static_argnames=("case", "anchors_t", "ncls"))
def _dense_forward(w_all, b_all, x_nchw, *, case, anchors_t, ncls):
    """Static-shape forward (jitted once): backbone stand-in + ONE fused Pallas
    call over all three scales.  Returns per-scale (18, N*Hs*Ws) lane-dense box
    tables; rows 0..2 hold the RAW conf logits (sigmoid applied post-gather)."""
    n, c, h, w = x_nchw.shape
    assert h % 32 == 0 and w % 32 == 0
    # Backbone stand-in: one pass over the NCHW input (no full-size transpose),
    # /8 map by 8x8 average pooling, /16 and /32 derived by further 2x2 pooling.
    # TODO(synk): Yolo_V3_Net (Darknet-53, params/net178.pt) is not defined in the
    # source module; replaced by this deterministic synthetic stand-in.
    f8 = x_nchw.reshape(n, c, h // 8, 8, w // 8, 8).mean(axis=(3, 5))
    f16 = f8.reshape(n, c, h // 16, 2, w // 16, 2).mean(axis=(3, 5))
    f32s = f16.reshape(n, c, h // 32, 2, w // 32, 2).mean(axis=(3, 5))
    feats = {32: f32s, 16: f16, 8: f8}

    ms, fT, gidx = [], [], []
    for s in (32, 16, 8):                      # output order matches torch 13/26/52
        fs = feats[s]
        hs, ws = fs.shape[2], fs.shape[3]
        m = n * hs * ws
        ms.append(m)
        # (n,c,hs,ws) -> (c, n*hs*ws): only the small pooled maps are transposed.
        fT.append(fs.transpose(1, 0, 2, 3).reshape(c, m).astype(jnp.bfloat16))
        hh = jnp.broadcast_to(jnp.arange(hs, dtype=jnp.float32)[None, :, None],
                              (n, hs, ws)).reshape(1, m)
        ww = jnp.broadcast_to(jnp.arange(ws, dtype=jnp.float32)[None, None, :],
                              (n, hs, ws)).reshape(1, m)
        gidx.append(jnp.concatenate([hh, ww], axis=0))

    tile = _pick_tile(ms)
    pads = [_round_up(m, tile) for m in ms]    # per-scale padding only up to one tile
    feat_all = jnp.concatenate(
        [jnp.pad(a, ((0, 0), (0, p - m))) for a, m, p in zip(fT, ms, pads)], axis=1)
    gidx_all = jnp.concatenate(
        [jnp.pad(a, ((0, 0), (0, p - m))) for a, m, p in zip(gidx, ms, pads)], axis=1)
    m_total = sum(pads)
    n_tiles = m_total // tile
    t = [p // tile for p in pads]
    bounds = (t[0], t[0] + t[1])               # static tile-index -> scale thresholds
    socs = tuple(float(s) / case for s in (32, 16, 8))

    anch_all = jnp.asarray(
        [[an[0][0], an[1][0], an[2][0], an[0][1], an[1][1], an[2][1]]
         for an in anchors_t], dtype=jnp.float32).reshape(3, 6, 1) / case

    cols, cin = w_all.shape[1], w_all.shape[2]

    def scale_block(i):                        # static tile -> scale selection
        sid = ((jnp.asarray(i) >= bounds[0]).astype(jnp.int32)
               + (jnp.asarray(i) >= bounds[1]).astype(jnp.int32))
        return sid, 0, 0

    kern = functools.partial(_head_decode_kernel, socs=socs, bounds=bounds,
                             ncls=ncls, cin=cin)
    out18 = pl.pallas_call(
        kern,
        out_shape=jax.ShapeDtypeStruct((18, m_total), jnp.float32),
        grid=(n_tiles,),
        in_specs=[pl.BlockSpec((2, tile), lambda i: (0, i)),        # grid indices
                  pl.BlockSpec((c, tile), lambda i: (0, i)),        # bf16 features
                  pl.BlockSpec((1, cols, cin), scale_block),        # per-scale weight
                  pl.BlockSpec((1, cols, 1), scale_block),          # per-scale bias
                  pl.BlockSpec((1, 6, 1), scale_block)],            # per-scale anchors
        out_specs=pl.BlockSpec((18, tile), lambda i: (0, i)),       # lane-dense output
        compiler_params=pltpu.CompilerParams(
            dimension_semantics=("parallel",)),  # M-tiles shard across v7x's 2 TCs
    )(gidx_all, feat_all, w_all, b_all, anch_all)

    outs, off = [], 0
    for m, p in zip(ms, pads):
        outs.append(out18[:, off:off + m])      # drop per-scale padded tail columns
        off += p
    return tuple(outs)


class Detector:
    """JAX/Pallas port of the torch Detector post-processing."""

    def __init__(self, in_channels=4, num_classes=3, key=None):
        if key is None:
            key = jax.random.PRNGKey(0)
        self.ncls = num_classes
        d = 5 + num_classes
        cout = 3 * d
        # Field-grouped row permutation of the head output channels so the kernel
        # decodes each field for all three anchors with contiguous sublane slices:
        # [conf a0..a2 | tx | ty | tw | th | cls a0 | cls a1 | cls a2]
        perm = ([a * d + f for f in range(5) for a in range(3)]
                + [a * d + 5 + cc for a in range(3) for cc in range(num_classes)])
        perm = jnp.asarray(perm, dtype=jnp.int32)
        ks = jax.random.split(key, 6)
        w_rows, b_rows = [], []
        for i in range(3):                           # scales 32, 16, 8
            wkey, bkey = ks[2 * i], ks[2 * i + 1]
            wgt = (0.1 * jax.random.normal(wkey, (cout, in_channels))).astype(jnp.float32)
            b = (0.1 * jax.random.normal(bkey, (cout, 1))).astype(jnp.float32)
            w_rows.append(wgt[perm, :])
            b_rows.append(b[perm, :])
        self.w_all = jnp.stack(w_rows, axis=0)       # (3, 3*(5+ncls), Cin)
        self.b_all = jnp.stack(b_rows, axis=0)       # (3, 3*(5+ncls), 1)

    def __call__(self, x_nchw, thresh, anchors, case):
        anchors_t = tuple(tuple((float(aw), float(ah)) for aw, ah in anchors[s])
                          for s in (32, 16, 8))
        dense = _dense_forward(self.w_all, self.b_all, x_nchw, case=float(case),
                               anchors_t=anchors_t, ncls=self.ncls)
        outs = []
        for tbl in dense:                            # tbl: (18, M) lane-dense table
            m = tbl.shape[1]
            # Exact torch semantics: threshold the RAW conf logit; detections are
            # ordered row-major over (n, h, w, anchor).  Only the tiny (3, M) conf
            # block is transposed; the dense table is never re-laid-out in HBM.
            # TODO(synk): dynamic-shape nonzero()/gather has no static-shape Pallas
            # equivalent; a fixed-capacity top-k compaction would keep this jitted.
            conf = tbl[0:3, :].T.reshape(-1)         # (3M,) ordered (m, anchor)
            sel = jnp.nonzero(conf > thresh)[0]
            a_idx = sel % 3
            m_idx = sel // 3
            tbl6 = tbl.reshape(6, 3, m)              # [field, anchor, m]
            det = tbl6[:, a_idx, m_idx].T            # (K, 6) [p_raw, cx, cy, w, h, cls]
            det = jnp.concatenate([jax.nn.sigmoid(det[:, 0:1]), det[:, 1:]], axis=1)
            outs.append(det)
        return jnp.concatenate(outs, axis=0)


if __name__ == "__main__":
    key = jax.random.PRNGKey(0)
    kx, kp = jax.random.split(key)
    x = jax.random.normal(kx, (2, 4, 64, 64), dtype=jnp.float32)   # NCHW input
    anchors = {
        32: [(116.0, 90.0), (156.0, 198.0), (373.0, 326.0)],
        16: [(30.0, 61.0), (62.0, 45.0), (59.0, 119.0)],
        8:  [(10.0, 13.0), (16.0, 30.0), (33.0, 23.0)],
    }
    det = Detector(in_channels=4, num_classes=3, key=kp)
    out = det(x, thresh=0.0, anchors=anchors, case=1.0)
    jax.block_until_ready(out)
    assert out.ndim == 2 and out.shape[1] == 6
    assert bool(jnp.all(jnp.isfinite(out)))
    print("KERNEL_OK")
</pallas_src>

<mosaic_0001>
module attributes {stable_mosaic.version = 11 : i64} {
  func.func @_head_decode_kernel(%arg0: i32, %arg1: memref<2x128xf32, #tpu.memory_space<vmem>>, %arg2: memref<4x128xbf16, #tpu.memory_space<vmem>>, %arg3: memref<1x24x4xf32, #tpu.memory_space<vmem>>, %arg4: memref<1x24x1xf32, #tpu.memory_space<vmem>>, %arg5: memref<1x6x1xf32, #tpu.memory_space<vmem>>, %arg6: memref<18x128xf32, #tpu.memory_space<vmem>>) attributes {dimension_semantics = [#tpu.dimension_semantics<parallel>], iteration_bounds = array<i64: 3>, scalar_prefetch = 0 : i64, scratch_operands = 0 : i64, tpu.core_type = #tpu.core_type<tc>, window_params = [{transform_indices = @transform_0, window_bounds = array<i64: 2, 128>}, {transform_indices = @transform_1, window_bounds = array<i64: 4, 128>}, {transform_indices = @transform_2, window_bounds = array<i64: 1, 24, 4>}, {transform_indices = @transform_3, window_bounds = array<i64: 1, 24, 1>}, {transform_indices = @transform_4, window_bounds = array<i64: 1, 6, 1>}, {transform_indices = @transform_5, window_bounds = array<i64: 18, 128>}]} {
    %c1_i32 = arith.constant 1 : i32
    %0 = arith.cmpi slt, %arg0, %c1_i32 : i32
    %c2_i32 = arith.constant 2 : i32
    %1 = arith.cmpi slt, %arg0, %c2_i32 : i32
    %cst = arith.constant 1.600000e+01 : f32
    %cst_0 = arith.constant 8.000000e+00 : f32
    %2 = arith.select %1, %cst, %cst_0 : f32
    %cst_1 = arith.constant 3.200000e+01 : f32
    %3 = arith.select %0, %cst_1, %2 : f32
    %c0 = arith.constant 0 : index
    %c0_2 = arith.constant 0 : index
    %4 = vector.load %arg2[%c0, %c0_2] : memref<4x128xbf16, #tpu.memory_space<vmem>>, vector<4x128xbf16>
    %5 = arith.extf %4 : vector<4x128xbf16> to vector<4x128xf32>
    %c0_3 = arith.constant 0 : index
    %c0_4 = arith.constant 0 : index
    %c0_5 = arith.constant 0 : index
    %6 = vector.load %arg3[%c0_3, %c0_4, %c0_5] : memref<1x24x4xf32, #tpu.memory_space<vmem>>, vector<1x24x4xf32>
    %7 = vector.shape_cast %6 : vector<1x24x4xf32> to vector<24x4xf32>
    %c0_6 = arith.constant 0 : index
    %c0_7 = arith.constant 0 : index
    %c0_8 = arith.constant 0 : index
    %8 = vector.load %arg4[%c0_6, %c0_7, %c0_8] : memref<1x24x1xf32, #tpu.memory_space<vmem>>, vector<1x24x1xf32>
    %9 = vector.shape_cast %8 : vector<1x24x1xf32> to vector<24x1xf32>
    %10 = vector.extract_strided_slice %7 {offsets = [0, 0], sizes = [24, 1], strides = [1, 1]} : vector<24x4xf32> to vector<24x1xf32>
    %11 = vector.extract_strided_slice %5 {offsets = [0, 0], sizes = [1, 128], strides = [1, 1]} : vector<4x128xf32> to vector<1x128xf32>
    %12 = vector.broadcast %10 : vector<24x1xf32> to vector<24x128xf32>
    %13 = vector.broadcast %11 : vector<1x128xf32> to vector<24x128xf32>
    %14 = arith.mulf %12, %13 : vector<24x128xf32>
    %15 = vector.broadcast %9 : vector<24x1xf32> to vector<24x128xf32>
    %16 = arith.addf %15, %14 : vector<24x128xf32>
    %17 = vector.extract_strided_slice %7 {offsets = [0, 1], sizes = [24, 1], strides = [1, 1]} : vector<24x4xf32> to vector<24x1xf32>
    %18 = vector.extract_strided_slice %5 {offsets = [1, 0], sizes = [1, 128], strides = [1, 1]} : vector<4x128xf32> to vector<1x128xf32>
    %19 = vector.broadcast %17 : vector<24x1xf32> to vector<24x128xf32>
    %20 = vector.broadcast %18 : vector<1x128xf32> to vector<24x128xf32>
    %21 = arith.mulf %19, %20 : vector<24x128xf32>
    %22 = arith.addf %16, %21 : vector<24x128xf32>
    %23 = vector.extract_strided_slice %7 {offsets = [0, 2], sizes = [24, 1], strides = [1, 1]} : vector<24x4xf32> to vector<24x1xf32>
    %24 = vector.extract_strided_slice %5 {offsets = [2, 0], sizes = [1, 128], strides = [1, 1]} : vector<4x128xf32> to vector<1x128xf32>
    %25 = vector.broadcast %23 : vector<24x1xf32> to vector<24x128xf32>
    %26 = vector.broadcast %24 : vector<1x128xf32> to vector<24x128xf32>
    %27 = arith.mulf %25, %26 : vector<24x128xf32>
    %28 = arith.addf %22, %27 : vector<24x128xf32>
    %29 = vector.extract_strided_slice %7 {offsets = [0, 3], sizes = [24, 1], strides = [1, 1]} : vector<24x4xf32> to vector<24x1xf32>
    %30 = vector.extract_strided_slice %5 {offsets = [3, 0], sizes = [1, 128], strides = [1, 1]} : vector<4x128xf32> to vector<1x128xf32>
    %31 = vector.broadcast %29 : vector<24x1xf32> to vector<24x128xf32>
    %32 = vector.broadcast %30 : vector<1x128xf32> to vector<24x128xf32>
    %33 = arith.mulf %31, %32 : vector<24x128xf32>
    %34 = arith.addf %28, %33 : vector<24x128xf32>
    %c0_9 = arith.constant 0 : index
    %c0_10 = arith.constant 0 : index
    %35 = vector.load %arg1[%c0_9, %c0_10] : memref<2x128xf32, #tpu.memory_space<vmem>>, vector<1x128xf32>
    %c1 = arith.constant 1 : index
    %c0_11 = arith.constant 0 : index
    %36 = vector.load %arg1[%c1, %c0_11] : memref<2x128xf32, #tpu.memory_space<vmem>>, vector<1x128xf32>
    %37 = vector.extract_strided_slice %34 {offsets = [0, 0], sizes = [3, 128], strides = [1, 1]} : vector<24x128xf32> to vector<3x128xf32>
    %38 = vector.extract_strided_slice %34 {offsets = [3, 0], sizes = [3, 128], strides = [1, 1]} : vector<24x128xf32> to vector<3x128xf32>
    %39 = vector.broadcast %36 : vector<1x128xf32> to vector<3x128xf32>
    %40 = arith.addf %39, %38 : vector<3x128xf32>
    %41 = vector.broadcast %3 : f32 to vector<3x128xf32>
    %42 = arith.mulf %40, %41 : vector<3x128xf32>
    %43 = vector.extract_strided_slice %34 {offsets = [6, 0], sizes = [3, 128], strides = [1, 1]} : vector<24x128xf32> to vector<3x128xf32>
    %44 = vector.broadcast %35 : vector<1x128xf32> to vector<3x128xf32>
    %45 = arith.addf %44, %43 : vector<3x128xf32>
    %46 = vector.broadcast %3 : f32 to vector<3x128xf32>
    %47 = arith.mulf %45, %46 : vector<3x128xf32>
    %48 = vector.extract_strided_slice %34 {offsets = [9, 0], sizes = [6, 128], strides = [1, 1]} : vector<24x128xf32> to vector<6x128xf32>
    %49 = math.exp %48 : vector<6x128xf32>
    %c0_12 = arith.constant 0 : index
    %c0_13 = arith.constant 0 : index
    %c0_14 = arith.constant 0 : index
    %50 = vector.load %arg5[%c0_12, %c0_13, %c0_14] : memref<1x6x1xf32, #tpu.memory_space<vmem>>, vector<1x6x1xf32>
    %51 = vector.shape_cast %50 : vector<1x6x1xf32> to vector<6x1xf32>
    %52 = vector.broadcast %51 : vector<6x1xf32> to vector<6x128xf32>
    %53 = arith.mulf %49, %52 : vector<6x128xf32>
    %54 = tpu.iota {dimensions = array<i32: 0>} : vector<3x128xi32>
    %55 = vector.extract_strided_slice %34 {offsets = [15, 0], sizes = [3, 128], strides = [1, 1]} : vector<24x128xf32> to vector<3x128xf32>
    %cst_15 = arith.constant dense<0xFF800000> : vector<128xf32>
    %56 = vector.multi_reduction <maximumf>, %55, %cst_15 [0] : vector<3x128xf32> to vector<128xf32>
    %57 = vector.shape_cast %56 : vector<128xf32> to vector<1x128xf32>
    %58 = vector.broadcast %57 : vector<1x128xf32> to vector<3x128xf32>
    %59 = arith.cmpf oeq, %55, %58 : vector<3x128xf32>
    %c3_i32 = arith.constant 3 : i32
    %60 = vector.broadcast %c3_i32 : i32 to vector<3x128xi32>
    %61 = arith.select %59, %54, %60 : vector<3x128xi1>, vector<3x128xi32>
    %cst_16 = arith.constant dense<2147483647> : vector<128xi32>
    %62 = vector.multi_reduction <minsi>, %61, %cst_16 [0] : vector<3x128xi32> to vector<128xi32>
    %63 = vector.shape_cast %62 : vector<128xi32> to vector<1x128xi32>
    %64 = arith.sitofp %63 : vector<1x128xi32> to vector<1x128xf32>
    %65 = vector.extract_strided_slice %34 {offsets = [18, 0], sizes = [3, 128], strides = [1, 1]} : vector<24x128xf32> to vector<3x128xf32>
    %cst_17 = arith.constant dense<0xFF800000> : vector<128xf32>
    %66 = vector.multi_reduction <maximumf>, %65, %cst_17 [0] : vector<3x128xf32> to vector<128xf32>
    %67 = vector.shape_cast %66 : vector<128xf32> to vector<1x128xf32>
    %68 = vector.broadcast %67 : vector<1x128xf32> to vector<3x128xf32>
    %69 = arith.cmpf oeq, %65, %68 : vector<3x128xf32>
    %c3_i32_18 = arith.constant 3 : i32
    %70 = vector.broadcast %c3_i32_18 : i32 to vector<3x128xi32>
    %71 = arith.select %69, %54, %70 : vector<3x128xi1>, vector<3x128xi32>
    %cst_19 = arith.constant dense<2147483647> : vector<128xi32>
    %72 = vector.multi_reduction <minsi>, %71, %cst_19 [0] : vector<3x128xi32> to vector<128xi32>
    %73 = vector.shape_cast %72 : vector<128xi32> to vector<1x128xi32>
    %74 = arith.sitofp %73 : vector<1x128xi32> to vector<1x128xf32>
    %75 = vector.extract_strided_slice %34 {offsets = [21, 0], sizes = [3, 128], strides = [1, 1]} : vector<24x128xf32> to vector<3x128xf32>
    %cst_20 = arith.constant dense<0xFF800000> : vector<128xf32>
    %76 = vector.multi_reduction <maximumf>, %75, %cst_20 [0] : vector<3x128xf32> to vector<128xf32>
    %77 = vector.shape_cast %76 : vector<128xf32> to vector<1x128xf32>
    %78 = vector.broadcast %77 : vector<1x128xf32> to vector<3x128xf32>
    %79 = arith.cmpf oeq, %75, %78 : vector<3x128xf32>
    %c3_i32_21 = arith.constant 3 : i32
    %80 = vector.broadcast %c3_i32_21 : i32 to vector<3x128xi32>
    %81 = arith.select %79, %54, %80 : vector<3x128xi1>, vector<3x128xi32>
    %cst_22 = arith.constant dense<2147483647> : vector<128xi32>
    %82 = vector.multi_reduction <minsi>, %81, %cst_22 [0] : vector<3x128xi32> to vector<128xi32>
    %83 = vector.shape_cast %82 : vector<128xi32> to vector<1x128xi32>
    %84 = arith.sitofp %83 : vector<1x128xi32> to vector<1x128xf32>
    %85 = tpu.concatenate %64, %74, %84 in 0 : vector<1x128xf32>, vector<1x128xf32>, vector<1x128xf32> -> vector<3x128xf32>
    %86 = tpu.concatenate %37, %42, %47, %53, %85 in 0 : vector<3x128xf32>, vector<3x128xf32>, vector<3x128xf32>, vector<6x128xf32>, vector<3x128xf32> -> vector<18x128xf32>
    %c0_23 = arith.constant 0 : index
    %c0_24 = arith.constant 0 : index
    %87 = vector.load %arg6[%c0_23, %c0_24] : memref<18x128xf32, #tpu.memory_space<vmem>>, vector<18x128xf32>
    tpu.vector_store %arg6[%c0_23, %c0_24], %86 {strides = array<i32>} : memref<18x128xf32, #tpu.memory_space<vmem>>, vector<18x128xf32>,
    return
  }
  func.func @transform_0(%arg0: i32) -> (i32, i32) {
    %c0_i32 = arith.constant 0 : i32
    %c0_i32_0 = arith.constant 0 : i32
    return %c0_i32, %arg0 : i32, i32
  }
  func.func @transform_1(%arg0: i32) -> (i32, i32) {
    %c0_i32 = arith.constant 0 : i32
    %c0_i32_0 = arith.constant 0 : i32
    return %c0_i32, %arg0 : i32, i32
  }
  func.func @transform_2(%arg0: i32) -> (i32, i32, i32) {
    %c1_i32 = arith.constant 1 : i32
    %0 = arith.cmpi sge, %arg0, %c1_i32 : i32
    %1 = arith.extui %0 : i1 to i32
    %c2_i32 = arith.constant 2 : i32
    %2 = arith.cmpi sge, %arg0, %c2_i32 : i32
    %3 = arith.extui %2 : i1 to i32
    %4 = arith.addi %1, %3 : i32
    %c0_i32 = arith.constant 0 : i32
    %c0_i32_0 = arith.constant 0 : i32
    %c0_i32_1 = arith.constant 0 : i32
    return %4, %c0_i32, %c0_i32_0 : i32, i32, i32
  }
  func.func @transform_3(%arg0: i32) -> (i32, i32, i32) {
    %c1_i32 = arith.constant 1 : i32
    %0 = arith.cmpi sge, %arg0, %c1_i32 : i32
    %1 = arith.extui %0 : i1 to i32
    %c2_i32 = arith.constant 2 : i32
    %2 = arith.cmpi sge, %arg0, %c2_i32 : i32
    %3 = arith.extui %2 : i1 to i32
    %4 = arith.addi %1, %3 : i32
    %c0_i32 = arith.constant 0 : i32
    %c0_i32_0 = arith.constant 0 : i32
    %c0_i32_1 = arith.constant 0 : i32
    return %4, %c0_i32, %c0_i32_0 : i32, i32, i32
  }
  func.func @transform_4(%arg0: i32) -> (i32, i32, i32) {
    %c1_i32 = arith.constant 1 : i32
    %0 = arith.cmpi sge, %arg0, %c1_i32 : i32
    %1 = arith.extui %0 : i1 to i32
    %c2_i32 = arith.constant 2 : i32
    %2 = arith.cmpi sge, %arg0, %c2_i32 : i32
    %3 = arith.extui %2 : i1 to i32
    %4 = arith.addi %1, %3 : i32
    %c0_i32 = arith.constant 0 : i32
    %c0_i32_0 = arith.constant 0 : i32
    %c0_i32_1 = arith.constant 0 : i32
    return %4, %c0_i32, %c0_i32_0 : i32, i32, i32
  }
  func.func @transform_5(%arg0: i32) -> (i32, i32) {
    %c0_i32 = arith.constant 0 : i32
    %c0_i32_0 = arith.constant 0 : i32
    return %c0_i32, %arg0 : i32, i32
  }
}

</mosaic_0001>

<bundles_post_ra>
// kernel: _dense_forward.1
= control target key start
LH: loop header
LB: loop body
LE: loop exit
PB: predicated region body
PF: predicated region fallthrough
CT: control target
= control target key end

     0   :  { %s898_s18 = smov 0   ;;  %s900_s19 = smov 0   ;;  %s1019_s0 = inlined_call_operand.vmem [shape: f32[2,384], index: 0, kind: input, shape index: {}]   ;;  %s1020_s1 = inlined_call_operand.vmem [shape: bf16[4,384], index: 1, kind: input, shape index: {}]   ;;  %s1021_s2 = inlined_call_operand.vmem [shape: f32[3,24,4], index: 2, kind: input, shape index: {}]   ;;  %s1022_s3 = inlined_call_operand.vmem [shape: f32[3,24,1], index: 3, kind: input, shape index: {}]   ;;  %s1023_s4 = inlined_call_operand.vmem [shape: f32[3,6,1], index: 4, kind: input, shape index: {}]   ;;  %s1024_s5 = inlined_call_operand.vmem [shape: f32[18,384], index: 5, kind: output, shape index: {}]  }
   0x1   :  { %s902_s20 = smov 0  }
   0x2 LB: > { %s911_s21 = sadd.s32 4294967295, %s862_s20   ;;  %s913_s22 = sadd.s32 1, %s862_s20   ;;  %s862_s20 = sphi %s902_s20, %s1028_s20   ;;  %s858_s19 = sphi %s900_s19, %s1027_s19   ;;  %s854_s18 = sphi %s898_s18, %s1026_s18  }
   0x3   : > { %s179_s23 = ssub.s32 %s862_s20, %s913_s22  ;;  %s182_s24 = sadd.s32 1, %s858_s19 }
   0x4   : > { %p180_p0 = scmp.eq.s32.totalorder %s179_s23, 0  ;;  %p192_p1 = scmp.ne.s32.totalorder %s858_s19, %s854_s18 }
   0x5   : > { %p193_p2 = scmp.eq.s32.totalorder %s911_s21, 2  ;;  %p783_p3 = scmp.ge.s32.totalorder %s862_s20, 1 }
   0x6   : > { %s921_s25 = scalar_select %p180_p0, %s858_s19, %s182_s24  }
   0x7   : > { %p923_p4 = por %p193_p2, %p192_p1  ;;  %p284_p5 = scmp.lt.s32.totalorder %s862_s20, 4 }
   0x9   : > { %p285_p6 = pnand %p783_p3, %p284_p5 }
   0xa   : > { %p351_p7 = scmp.ge.s32.totalorder (!%p285_p6), %s911_s21, 1  ;;  %p353_p8 = scmp.ge.s32.totalorder (!%p285_p6), %s911_s21, 2  ;;  %v864_v0 = vmov (!%p285_p6), 0   ;;  %v865_v5 = vmov (!%p285_p6), 1   ;;  %v866_v6 = vmov (!%p285_p6), 2   ;;  %v867_v7 = vmov (!%p285_p6), 3  }
   0xb   : > { %288 = sbr.rel (%p285_p6) target bundleno = 232 (0xe8), region = 40  ;;  %825 = vset.pattern.permute.xlu1 (!%p285_p6), %v864_v0  ;;  %824 = vset.pattern.permute.xlu0 (!%p285_p6), %v864_v0  ;;  %p343_p10 = scmp.lt.s32.totalorder (!%p285_p6), %s911_s21, 2  ;;  %v422_v11 = vlaneseq (!%p285_p6)  ;;  %vm542_vm0 = vcmask (!%p285_p6), 1047559   ;;  %vm572_vm1 = vcmask (!%p285_p6), 1044482   ;;  %vm594_vm2 = vcmask (!%p285_p6), 1047557  }
   0xc   : > { %vm544_vm3 = vcmask (!%p285_p6), 1041408   ;;  %p395_p11 = scmp.lt.s32.totalorder (!%p285_p6), %s911_s21, 1  ;;  %s340_s6 = sand.u32 (!%p285_p6), 1, %s854_s18   ;;  %vm622_vm8 = vcmask (!%p285_p6), 1042432   ;;  %vm624_vm12 = vcmask (!%p285_p6), 1045504  }
   0xd   : > { %v954_v14 = vshrl.u32 (!%p285_p6), %v422_v11, 7  ;;  %s794_s7 = smul.u32 (!%p285_p6), 24, %s340_s6 }
   0xf   : > { %v424_v18 = vsub.s32 (!%p285_p6), 0, %v954_v14  ;;  %v461_v20 = vsub.s32 (!%p285_p6), 1, %v954_v14  ;;  %v483_v23 = vsub.s32 (!%p285_p6), 2, %v954_v14  ;;  %v505_v26 = vsub.s32 (!%p285_p6), 3, %v954_v14  ;;  %s992_s18 = scalar_lea.vmem (!%p285_p6), [#allocation2], %s794_s7 }
  0x12   : > { %s352_s27 = scalar_select %p351_p7, 1, 0 }
  0x13   : > { %s354_s28 = scalar_select %p353_p8, 1, 0 }
  0x14   : > { %s946_s16 = scalar_select %p343_p10, %s911_s21, 2 }
  0x15   : > { %s355_s29 = sadd.s32 %s354_s28, %s352_s27 }
  0x16   : > { %p356_p9 = scmp.lt.s32.totalorder %s355_s29, 2  ;;  %s784_s17 = sshll.u32 %s946_s16, 1 }
  0x17   : > { %s350_s24 = scalar_lea.vmem %s1020_s1, %s784_s17 }
  0x18   : > { %s1030_s29 = smov (!%p356_p9, %s355_s29), 2  ;;  %v399_v15 = vld [vmem:[%s350_s24] sm:$0x3] }
  0x19   : > { %s795_s30 = smul.u32 24, %s1030_s29  ;;  %s788_s12 = sshll.u32 %s1030_s29, 3  ;;  %v400_v19 = vunpack.c.l.bf16 %v399_v15  ;;  %v603_v15 = vrot.slane %v954_v14, 3 }
  0x1a   : > { %s389_s15 = scalar_lea.vmem %s1023_s4, %s788_s12 }
  0x1b   : > { %s375_s8 = scalar_lea.vmem %s1022_s3, %s795_s30  ;;  %s360_s11 = scalar_lea.vmem %s1021_s2, %s795_s30  ;;  %v532_v10 = vld [vmem:[%s389_s15] sm:$0x3f]  ;;  %v425_v22 = vrot.slane %v400_v19, %v424_v18  ;;  %v462_v25 = vrot.slane %v400_v19, %v461_v20  ;;  %v484_v29 = vrot.slane %v400_v19, %v483_v23  ;;  %v506_v32 = vrot.slane %v400_v19, %v505_v26 }
  0x1c   : > { %v405_v1 = vld [vmem:[%s375_s8 + $0x8] sm:$0xff]  ;;  %v406_v3 = vld [vmem:[%s375_s8 + $0x10] sm:$0xff]  ;;  %v401_v8 = vld [vmem:[%s360_s11] sm:$0xff]  ;;  %s397_s27 = scalar_select %p343_p10, 16.0, 8.0 }
  0x1d   : > { %v402_v2 = vld [vmem:[%s360_s11 + $0x8] sm:$0xff]  ;;  %436 = vperm.xlu1 %825, %v405_v1   ;;  %v403_v4 = vld [vmem:[%s360_s11 + $0x10] sm:$0xff]  ;;  %v404_v9 = vld [vmem:[%s375_s8] sm:$0xff]  ;;  %s346_s30 = scalar_lea.vmem %s1019_s0, %s784_s17  ;;  %s791_s8 = sshll.u32 (%p923_p4), %s911_s21, 3 }
  0x1e   : > { %414 = vperm.xlu0 %824, %v402_v2   ;;  %s1032_s27 = smov (%p395_p11, %s397_s27), 32.0  ;;  %s640_s11 = scalar_lea.vmem (%p923_p4), %s1024_s5, %s791_s8 }
  0x21   : > { %441 = vperm.xlu1 %825, %v406_v3  }
  0x22   : > { %419 = vperm.xlu0 %824, %v403_v4  }
  0x25   : > { %827 = vset.pattern.permute.xlu1 %v865_v5 }
  0x26   : > { %826 = vset.pattern.permute.xlu0 %v865_v5  ;;  %456 = vperm.xlu1 %827, %v403_v4  }
  0x27   : > { %452 = vperm.xlu0 %826, %v402_v2  }
  0x2a   : > { %828 = vset.pattern.permute.xlu1 %v866_v6 }
  0x2b   : > { %829 = vset.pattern.permute.xlu0 %v866_v6  ;;  %474 = vperm.xlu1 %828, %v402_v2  }
  0x2c   : > { %478 = vperm.xlu0 %829, %v403_v4  }
  0x2f   : > { %830 = vset.pattern.permute.xlu1 %v867_v7 }
  0x30   : > { %831 = vset.pattern.permute.xlu0 %v864_v0  ;;  %496 = vperm.xlu1 %830, %v402_v2  }
  0x31   : > { %409 = vperm.xlu0 %831, %v401_v8  }
  0x34   : > { %500 = vperm.xlu1 %830, %v403_v4  }
  0x35   : > { %834 = vset.pattern.permute.xlu0 %v866_v6 }
  0x36   : > { %470 = vperm.xlu0 %834, %v401_v8  }
  0x38   : > { %832 = vset.pattern.permute.xlu1 %v864_v0 }
  0x39   : > { %431 = vperm.xlu1 %832, %v404_v9  }
  0x3a   : > { %837 = vset.pattern.permute.xlu0 %v864_v0 }
  0x3d   : > { %833 = vset.pattern.permute.xlu1 %v865_v5 }
  0x3e   : > { %448 = vperm.xlu1 %833, %v401_v8  }
  0x42   : > { %835 = vset.pattern.permute.xlu1 %v867_v7 }
  0x43   : > { %492 = vperm.xlu1 %835, %v401_v8  }
  0x47   : > { %836 = vset.pattern.permute.xlu1 %v864_v0 }
  0x48   : > { %535 = vperm.xlu1 %836, %v532_v10  }
  0x9c   : > { %v437_v12 = vpop.permute.xlu1 %436 }
  0x9d   : > { %v415_v13 = vpop.permute.xlu0 %414 }
  0x9e   : > { %v427_v27 = vmul.f32 %v425_v22, %v415_v13  ;;  %v581_v13 = vrot.slane %v954_v14, 6 }
  0xa0   : > { %v442_v16 = vpop.permute.xlu1 %441  ;;  %v445_v34 = vadd.f32 %v437_v12, %v427_v27  ;;  %v981_v27 = vstv %s1032_s27 }
  0xa1   : > { %v420_v17 = vpop.permute.xlu0 %419 }
  0xa2   : > { %v428_v30 = vmul.f32 %v425_v22, %v420_v17 }
  0xa4   : > { %v446_v38 = vadd.f32 %v442_v16, %v428_v30  ;;  %v790_v30 = vld [vmem:[%s346_s30] ss:$0 sm:$0xff] }
  0xa5   : > { %v457_v21 = vpop.permute.xlu1 %456 }
  0xa6   : > { %v453_v24 = vpop.permute.xlu0 %452  ;;  %v465_v35 = vmul.f32 %v462_v25, %v457_v21 }
  0xa7   : > { %v464_v31 = vmul.f32 %v462_v25, %v453_v24 }
  0xa8   : > { %v468_v42 = vadd.f32 %v465_v35, %v446_v38 }
  0xa9   : > { %v467_v39 = vadd.f32 %v464_v31, %v445_v34 }
  0xaa   : > { %v475_v28 = vpop.permute.xlu1 %474 }
  0xab   : > { %v479_v33 = vpop.permute.xlu0 %478  ;;  %v486_v36 = vmul.f32 %v484_v29, %v475_v28  ;;  %v789_v28 = vld [vmem:[%s346_s30 + $0x1] ss:$0 sm:$0xff] }
  0xac   : > { %v487_v40 = vmul.f32 %v484_v29, %v479_v33 }
  0xad   : > { %v489_v43 = vadd.f32 %v486_v36, %v467_v39 }
  0xae   : > { %v490_v45 = vadd.f32 %v487_v40, %v468_v42 }
  0xaf   : > { %v497_v37 = vpop.permute.xlu1 %496 }
  0xb0   : > { %v508_v41 = vmul.f32 %v506_v32, %v497_v37  ;;  %v410_v48 = vpop.permute.xlu0 %409 }
  0xb1   : > { %v426_v50 = vmul.f32 %v425_v22, %v410_v48  ;;  %v555_v22 = vrot.slane %v954_v14, 1 }
  0xb2   : > { %v960_v46 = vadd.f32 %v508_v41, %v489_v43 }
  0xb3   : > { %v501_v44 = vpop.permute.xlu1 %500 }
  0xb4   : > { %v509_v47 = vmul.f32 %v506_v32, %v501_v44  ;;  %v543_v51 = vsel %vm542_vm0, %v960_v46, -inf  ;;  %v530_v38 = vmul.f32 1.442695, %v960_v46 }
  0xb5   : > { %v471_v62 = vpop.permute.xlu0 %470 }
  0xb6   : > { %v512_v49 = vadd.f32 %v509_v47, %v490_v45  ;;  %v485_v5 = vmul.f32 %v484_v29, %v471_v62  ;;  %838 = vpow2.f32 %v530_v38 }
  0xb8   : > { %v573_v52 = vsel %vm572_vm1, %v512_v49, -inf  ;;  %v595_v53 = vsel %vm594_vm2, %v512_v49, -inf  ;;  %v432_v54 = vpop.permute.xlu1 %431  ;;  %v545_v55 = vsel %vm544_vm3, %v512_v49, -inf }
  0xb9   : > { %v574_v56 = vrot.slane %v573_v52, 4  ;;  %v596_v57 = vrot.slane %v595_v53, 4  ;;  %v546_v58 = vmax.f32 %v543_v51, %v545_v55  ;;  %v444_v63 = vadd.f32 %v432_v54, %v426_v50 }
  0xbb   : > { %v575_v59 = vmax.f32 %v573_v52, %v574_v56  ;;  %v597_v60 = vmax.f32 %v595_v53, %v596_v57  ;;  %v547_v61 = vrot.slane %v546_v58, 4 }
  0xbd   : > { %v576_v0 = vrot.slane %v575_v59, 2  ;;  %v598_v1 = vrot.slane %v597_v60, 2  ;;  %v449_v2 = vpop.permute.xlu1 %448  ;;  %v548_v3 = vmax.f32 %v546_v58, %v547_v61 }
  0xbe   : > { %v463_v4 = vmul.f32 %v462_v25, %v449_v2 }
  0xbf   : > { %v577_v6 = vmax.f32 %v575_v59, %v576_v0  ;;  %v599_v7 = vmax.f32 %v597_v60, %v598_v1  ;;  %v549_v8 = vrot.slane %v548_v3, 2 }
  0xc0   : > { %v466_v9 = vadd.f32 %v463_v4, %v444_v63  ;;  %v527_v63 = vadd.f32 %v790_v30, %v960_v46  ;;  %v839_v1 = vpop.eup %838 }
  0xc1   : > { %v578_v10 = vrot.slane %v577_v6, 1  ;;  %v600_v11 = vrot.slane %v599_v7, 1  ;;  %v550_v12 = vmax.f32 %v548_v3, %v549_v8 }
  0xc2   : > { %v493_v16 = vpop.permute.xlu1 %492  ;;  %v488_v17 = vadd.f32 %v485_v5, %v466_v9 }
  0xc3   : > { %v579_v18 = vmax.f32 %v577_v6, %v578_v10  ;;  %v601_v19 = vmax.f32 %v599_v7, %v600_v11  ;;  %v507_v20 = vmul.f32 %v506_v32, %v493_v16  ;;  %v551_v21 = vrot.slane %v550_v12, 1 }
  0xc4   : > { %v529_v7 = vmul.f32 %v527_v63, %v981_v27 }
  0xc5   : > { %vm580_vm4 = vcmp.eq.f32.partialorder %v512_v49, %v579_v18  ;;  %vm602_vm5 = vcmp.eq.f32.partialorder %v512_v49, %v601_v19  ;;  %v552_v23 = vmax.f32 %v550_v12, %v551_v21  ;;  %v510_v24 = vadd.f32 %v507_v20, %v488_v17 }
  0xc6   : > { %v582_v25 = vsel %vm580_vm4, %v581_v13, 3  ;;  %v604_v26 = vsel %vm602_vm5, %v603_v15, 3  ;;  %vm616_vm5 = vcmask 1040384  }
  0xc7   : > { %v605_v29 = vsel %vm594_vm2, %v604_v26, 2147483647  ;;  %vm553_vm6 = vcmp.eq.f32.partialorder %v960_v46, %v552_v23  ;;  %vm554_vm7 = vcmp.eq.f32.partialorder %v512_v49, %v552_v23  ;;  %v583_v14 = vsel %vm572_vm1, %v582_v25, 2147483647  ;;  %v536_v57 = vpop.permute.xlu1 %535 }
  0xc8   : > { %v606_v31 = vrot.slane %v605_v29, 4  ;;  %v556_v32 = vsel %vm553_vm6, %v555_v22, 3  ;;  %v557_v33 = vsel %vm554_vm7, %v555_v22, 3  ;;  %v584_v36 = vrot.slane %v583_v14, 4 }
  0xc9   : > { %v558_v34 = vsel %vm542_vm0, %v556_v32, 2147483647  ;;  %v559_v35 = vsel %vm544_vm3, %v557_v33, 2147483647  ;;  %v519_v37 = vadd.f32 %v789_v28, %v510_v24  ;;  %v526_v39 = vadd.f32 %v790_v30, %v510_v24 }
  0xca   : > { %vm560_vm9 = vcmp.lt.s32.totalorder %v558_v34, %v559_v35  ;;  %vm607_vm10 = vcmp.lt.s32.totalorder %v605_v29, %v606_v31  ;;  %vm585_vm11 = vcmp.lt.s32.totalorder %v583_v14, %v584_v36  ;;  %v537_v60 = vrot.slane %v536_v57, 7 }
  0xcb   : > { %v561_v40 = vsel %vm560_vm9, %v558_v34, %v559_v35  ;;  %v608_v41 = vsel %vm607_vm10, %v605_v29, %v606_v31  ;;  %v521_v42 = vmul.f32 %v981_v27, %v519_v37  ;;  %v586_v44 = vsel %vm585_vm11, %v583_v14, %v584_v36 }
  0xcc   : > { %v562_v43 = vrot.slane %v561_v40, 4  ;;  %v609_v45 = vrot.slane %v608_v41, 2  ;;  %v587_v47 = vrot.slane %v586_v44, 2  ;;  %v528_v48 = vmul.f32 %v526_v39, %v981_v27 }
  0xcd   : > { %v623_v49 = vsel %vm622_vm8, %v510_v24, %v521_v42  ;;  %v539_v4 = vmul.f32 %v839_v1, %v537_v60  ;;  %vm627_vm6 = vcmask 1046528  }
  0xce   : > { %vm563_vm13 = vcmp.lt.s32.totalorder %v561_v40, %v562_v43  ;;  %vm610_vm14 = vcmp.lt.s32.totalorder %v608_v41, %v609_v45  ;;  %vm588_vm15 = vcmp.lt.s32.totalorder %v586_v44, %v587_v47  ;;  %v625_v52 = vsel %vm624_vm12, %v623_v49, %v528_v48 }
  0xcf   : > { %v564_v50 = vsel %vm563_vm13, %v561_v40, %v562_v43  ;;  %v611_v51 = vsel %vm610_vm14, %v608_v41, %v609_v45  ;;  %v589_v54 = vsel %vm588_vm15, %v586_v44, %v587_v47  ;;  %629 = vst [vmem:[%s992_s18] sm:$0xff] %v625_v52  ;;  %v626_v10 = vsel %vm616_vm5, %v529_v7, %v539_v4 }
  0xd0   : > { %v565_v53 = vrot.slane %v564_v50, 2  ;;  %v612_v55 = vrot.slane %v611_v51, 1  ;;  %v590_v56 = vrot.slane %v589_v54, 1 }
  0xd2   : > { %vm566_vm0 = vcmp.lt.s32.totalorder %v564_v50, %v565_v53  ;;  %vm591_vm1 = vcmp.lt.s32.totalorder %v589_v54, %v590_v56  ;;  %vm613_vm2 = vcmp.lt.s32.totalorder %v611_v51, %v612_v55 }
  0xd3   : > { %v567_v58 = vsel %vm566_vm0, %v564_v50, %v565_v53  ;;  %v592_v61 = vsel %vm591_vm1, %v589_v54, %v590_v56  ;;  %v614_v62 = vsel %vm613_vm2, %v611_v51, %v612_v55 }
  0xd4   : > { %v568_v59 = vrot.slane %v567_v58, 1  ;;  %v593_v3 = vcvt.s32.f32 %v592_v61  ;;  %v615_v5 = vcvt.s32.f32 %v614_v62 }
  0xd6   : > { %vm569_vm4 = vcmp.lt.s32.totalorder %v567_v58, %v568_v59  ;;  %v672_v46 = vld [vmem:[%s992_s18] sm:$0xff] (%p923_p4) }
  0xd7   : > { %v570_v0 = vsel %vm569_vm4, %v567_v58, %v568_v59  ;;  %673 = vst [vmem:[%s640_s11] sm:$0xff] (%p923_p4), %v672_v46 }
  0xd8   : > { %v571_v2 = vcvt.s32.f32 %v570_v0 }
  0xd9   : > { %638 = sbr.rel (!%p923_p4) target bundleno = 232 (0xe8), region = 44 }
  0xda   : > { %v617_v6 = vsel %vm616_vm5, %v571_v2, %v593_v3 }
  0xdb   : > { %v618_v8 = vsel %vm544_vm3, %v617_v6, %v615_v5 }
  0xdc   : > { %v620_v9 = vrot.slane %v618_v8, 1 }
  0xde   : > { %v628_v11 = vsel %vm627_vm6, %v626_v10, %v620_v9  ;;  %631 = vst [vmem:[%s992_s18 + $0x10] sm:$0x3] %v620_v9 }
  0xdf   : > { %630 = vst [vmem:[%s992_s18 + $0x8] sm:$0xff] %v628_v11 }
  0xe5   : > { %v676_v13 = vld [vmem:[%s992_s18 + $0x10] sm:$0xff] }
  0xe6   : > { %v674_v12 = vld [vmem:[%s992_s18 + $0x8] sm:$0xff]  ;;  %677 = vst [vmem:[%s640_s11 + $0x30] sm:$0xff] %v676_v13 }
  0xe7   : > { %675 = vst [vmem:[%s640_s11 + $0x18] sm:$0xff] %v674_v12 }
  0xe8 PF: > { %p12_p12 = scmp.ge.s32.totalorder %s913_s22, 5   ;;  %s1026_s18 = smov %s858_s19 }
  0xe9   : > { %s1027_s19 = smov %s921_s25  ;;  %s1028_s20 = smov %s913_s22 }
  0xea   :  { %14 = sbr.rel (!%p12_p12) target bundleno = 2 (0x2), region = 120 }

</bundles_post_ra>
